<compile_context>
chip_gen: v5e
topology: v5e:2x2
jax: 0.10.0
libtpu: 0.0.40
codegen_flags: <defaults>
</compile_context>

<pallas_src>
import functools
import math

import jax
import jax.numpy as jnp
from jax.experimental import pallas as pl
from jax.experimental.pallas import tpu as pltpu

SFMX_T = 5.0
NUM_REL_CLS = 101
C_PAD = 128          # 101 relation classes padded to one full lane tile
NEG_BIG = -1e30      # finite "minus infinity" for masking padded class lanes


def _bag_attention_kernel(feat_ref, wcat_ref, bcat_ref, w2_ref, b2_ref, tgt_ref,
                          out_ref, *, tb, n):
    feats = feat_ref[...]                                   # (tb*n, H)

    # Fused matmul: [fc | discriminator layer 1]  ->  (tb*n, C_PAD + H).
    # Split at lane 128 is vreg-tile aligned.
    fused = jax.lax.dot_general(
        feats, wcat_ref[...], (((1,), (1,)), ((), ())),
        preferred_element_type=jnp.float32) + bcat_ref[...]
    att = fused[:, :C_PAD]                                  # (tb*n, 128)
    h_pre = fused[:, C_PAD:]                                # (tb*n, H)

    # ---- Bag softmax over N (per bag, temperature 5), kept tile-aligned by
    # regrouping the sublane axis into (tb, n).  For N a multiple of 8 this is
    # a layout-free reshape.
    # TODO(synk): for N not a multiple of 8, do this with an unrolled loop over
    #             tb-row windows instead of a reshape (avoids VMEM relayout).
    att3 = att.reshape(tb, n, C_PAD)
    s = att3 * (1.0 / SFMX_T)
    s = s - jnp.max(s, axis=1, keepdims=True)
    e = jnp.exp(s)
    sm = e / jnp.sum(e, axis=1, keepdims=True)              # exact divide

    # diag(fc(feat_rel)) == sum_n sm[n, c] * att[n, c]  (biases cancel since
    # each softmax column sums to 1).
    diag = jnp.sum(sm * att3, axis=1)                       # (tb, 128)

    # ---- Eval-mode class softmax over the 101 real classes (mask pad lanes).
    lane = jax.lax.broadcasted_iota(jnp.int32, (tb, C_PAD), 1)
    diag_m = jnp.where(lane < NUM_REL_CLS, diag, NEG_BIG)
    d = diag_m - jnp.max(diag_m, axis=1, keepdims=True)
    ed = jnp.exp(d)
    probs = ed * pl.reciprocal(jnp.sum(ed, axis=1, keepdims=True), approx=True)

    # ---- Discriminator head on the VPU/XLU: ReLU -> <h, w2> lane reduction.
    h = jnp.maximum(h_pre, 0.0)                             # (tb*n, H)
    x = jnp.sum(h * w2_ref[...], axis=1, keepdims=True) + b2_ref[...]  # (tb*n, 1)

    # BCEWithLogitsLoss (per-bag mean).  z = exp(-|x|) in (0, 1], so
    # log(1 + z) is fine in f32 without log1p.
    t = tgt_ref[...]                                        # (tb*n, 1)
    bce = jnp.maximum(x, 0.0) - x * t + jnp.log(1.0 + jnp.exp(-jnp.abs(x)))
    loss_col = jnp.mean(bce.reshape(tb, n, 1), axis=1)      # (tb, 1)

    # Single lane-dense output slab: lanes [0,101) = class softmax,
    # lane 101 = per-bag loss, remaining pad lanes stay ~0.
    out_ref[...] = jnp.where(lane == NUM_REL_CLS, loss_col, probs)


def prepare_bag_attention_params(params, compute_dtype=None):
    """One-time parameter preprocessing (hoisted out of the per-call path).

    Returns (w_cat, b_cat, w2_row, b2_s):
      w_cat: [w_fc zero-padded to 128 rows ; w1]  -> (C_PAD + H, H)
      b_cat: matching fused bias row              -> (1, C_PAD + H) f32
      w2_row / b2_s: discriminator output layer as (1, H) f32 / (1, 1) f32.
    """
    w_fc, b_fc, w1, b1, w2, b2 = params
    C, H = w_fc.shape
    assert C == NUM_REL_CLS and C <= C_PAD
    dt = compute_dtype if compute_dtype is not None else w_fc.dtype
    w_fc_pad = jnp.zeros((C_PAD, H), dt).at[:C, :].set(w_fc.astype(dt))
    w_cat = jnp.concatenate([w_fc_pad, w1.astype(dt)], axis=0)
    b_cat = jnp.concatenate([
        jnp.zeros((C_PAD,), jnp.float32).at[:C].set(b_fc.astype(jnp.float32)),
        b1.astype(jnp.float32)]).reshape(1, C_PAD + H)
    w2_row = w2.reshape(1, H).astype(jnp.float32)
    b2_s = b2.reshape(1, 1).astype(jnp.float32)
    return w_cat, b_cat, w2_row, b2_s


def _choose_tb(B, N, max_rows=512):
    """Bags per grid step.

    Small batches -> one step (no second TC to feed on v5e/v6e; minimizes
    prologue/epilogue).  Large batches -> largest multiple-of-8 divisor of B
    with <= max_rows flattened rows per step, which keeps the fused matmul's M
    dimension MXU-filling (>=256 rows where possible) and yields >=2 grid steps
    so both v7x TensorCores get work.
    """
    if B * N <= max_rows:
        return B
    tb = None
    d = 8
    while d < B:
        if B % d == 0 and d * N <= max_rows:
            tb = d
        d += 8
    return tb if tb is not None else B


def bag_attention_forward(features, bag_attention_target, prepared_params,
                          *, max_rows_per_step=512):
    """features: (B, N, H) or (N, H); bag_attention_target: (B, N) or (N,)."""
    w_cat, b_cat, w2_row, b2_s = prepared_params

    single = features.ndim == 2
    if single:
        features = features[None]
        bag_attention_target = bag_attention_target[None]

    B, N, H = features.shape
    TB = _choose_tb(B, N, max_rows_per_step)
    nblocks = B // TB
    assert nblocks * TB == B

    # Flatten bags so the kernel's fused matmul sees a tall (TB*N, H) LHS.
    feats2 = features.reshape(B * N, H)
    tgt_col = bag_attention_target.reshape(B * N, 1).astype(jnp.float32)

    const = lambda i: (0, 0)
    # VMEM budget per step (double-buffered features + resident weights) is a
    # few hundred KiB at these sizes; re-budget vmem_limit_bytes against v7x's
    # 64 MiB only when TB*N*H grows into the tens of MiB.
    out = pl.pallas_call(
        functools.partial(_bag_attention_kernel, tb=TB, n=N),
        grid=(nblocks,),
        out_shape=jax.ShapeDtypeStruct((B, C_PAD), jnp.float32),
        in_specs=[
            pl.BlockSpec((TB * N, H), lambda i: (i, 0)),        # features slab
            pl.BlockSpec((C_PAD + H, H), const),                # fused weight
            pl.BlockSpec((1, C_PAD + H), const),                # fused bias
            pl.BlockSpec((1, H), const),                        # w2 row
            pl.BlockSpec((1, 1), const),                        # b2
            pl.BlockSpec((TB * N, 1), lambda i: (i, 0)),        # target column
        ],
        out_specs=pl.BlockSpec((TB, C_PAD), lambda i: (i, 0)),  # logits+loss slab
        compiler_params=pltpu.CompilerParams(
            dimension_semantics=("parallel",)),
    )(feats2, w_cat, b_cat, w2_row, b2_s, tgt_col)

    bag_logits = out[:, :NUM_REL_CLS]        # (B, C)
    attention_loss = out[:, NUM_REL_CLS]     # (B,)  — loss rides lane 101
    if single:
        return bag_logits[0], attention_loss[0]
    return bag_logits, attention_loss


def _reference_single(features, target, params):
    """Pure-JAX reference mirroring the PyTorch eval-mode forward (one bag)."""
    w_fc, b_fc, w1, b1, w2, b2 = params
    att = features @ w_fc.T + b_fc                         # (N, C)
    sm = jax.nn.softmax(att.T / SFMX_T, axis=-1)           # (C, N)
    feat_rel = sm @ features                               # (C, H)
    logits = jnp.diagonal(feat_rel @ w_fc.T + b_fc)        # (C,)
    bag_logits = jax.nn.softmax(logits, axis=-1)
    h = jax.nn.relu(features @ w1.T + b1)
    x = (h @ w2.T + b2)[:, 0]
    bce = jnp.mean(jnp.maximum(x, 0.0) - x * target
                   + jnp.log1p(jnp.exp(-jnp.abs(x))))
    return bag_logits, bce


if __name__ == "__main__":
    B, N, H, C = 4, 8, 32, NUM_REL_CLS

    key = jax.random.PRNGKey(0)
    ks = jax.random.split(key, 8)

    features = jax.random.normal(ks[0], (B, N, H), jnp.float32)
    bag_attention_target = (jax.random.uniform(ks[1], (B, N)) > 0.5).astype(jnp.float32)

    # Deterministic synthetic parameters (shapes from the module's __init__):
    #   fc            : Linear(H -> 101)
    #   discriminator : Linear(H -> H), ReLU, Linear(H -> 1)
    w_fc = jax.random.normal(ks[2], (C, H), jnp.float32) / math.sqrt(H)
    b_fc = 0.01 * jax.random.normal(ks[3], (C,), jnp.float32)
    w1 = jax.random.normal(ks[4], (H, H), jnp.float32) / math.sqrt(H)
    b1 = 0.01 * jax.random.normal(ks[5], (H,), jnp.float32)
    w2 = jax.random.normal(ks[6], (1, H), jnp.float32) / math.sqrt(H)
    b2 = 0.01 * jax.random.normal(ks[7], (1,), jnp.float32)
    params = (w_fc, b_fc, w1, b1, w2, b2)

    # One-time fused/padded parameter preprocessing (hoisted out of the call).
    prepared = jax.block_until_ready(prepare_bag_attention_params(params))

    bag_logits, attention_loss = bag_attention_forward(
        features, bag_attention_target, prepared)
    jax.block_until_ready((bag_logits, attention_loss))

    ref_logits, ref_loss = jax.vmap(
        lambda f, t: _reference_single(f, t, params))(features, bag_attention_target)

    assert bag_logits.shape == (B, C)
    assert attention_loss.shape == (B,)
    assert jnp.allclose(bag_logits, ref_logits, atol=2e-3, rtol=2e-3), "bag_logits mismatch"
    assert jnp.allclose(attention_loss, ref_loss, atol=2e-3, rtol=2e-3), "loss mismatch"

    print("KERNEL_OK")
</pallas_src>

<mosaic_0001>
module attributes {stable_mosaic.version = 11 : i64} {
  func.func @_bag_attention_kernel(%arg0: i32, %arg1: memref<32x32xf32, #tpu.memory_space<vmem>>, %arg2: memref<160x32xf32, #tpu.memory_space<vmem>>, %arg3: memref<1x160xf32, #tpu.memory_space<vmem>>, %arg4: memref<1x32xf32, #tpu.memory_space<vmem>>, %arg5: memref<1x1xf32, #tpu.memory_space<vmem>>, %arg6: memref<32x1xf32, #tpu.memory_space<vmem>>, %arg7: memref<4x128xf32, #tpu.memory_space<vmem>>) attributes {dimension_semantics = [#tpu.dimension_semantics<parallel>], iteration_bounds = array<i64: 1>, scalar_prefetch = 0 : i64, scratch_operands = 0 : i64, tpu.core_type = #tpu.core_type<tc>, window_params = [{transform_indices = @transform_0, window_bounds = array<i64: 32, 32>}, {pipeline_mode = #tpu.pipeline_mode<synchronous>, transform_indices = @transform_1, window_bounds = array<i64: 160, 32>}, {pipeline_mode = #tpu.pipeline_mode<synchronous>, transform_indices = @transform_2, window_bounds = array<i64: 1, 160>}, {pipeline_mode = #tpu.pipeline_mode<synchronous>, transform_indices = @transform_3, window_bounds = array<i64: 1, 32>}, {pipeline_mode = #tpu.pipeline_mode<synchronous>, transform_indices = @transform_4, window_bounds = array<i64: 1, 1>}, {transform_indices = @transform_5, window_bounds = array<i64: 32, 1>}, {transform_indices = @transform_6, window_bounds = array<i64: 4, 128>}]} {
    %c0 = arith.constant 0 : index
    %c0_0 = arith.constant 0 : index
    %0 = vector.load %arg1[%c0, %c0_0] : memref<32x32xf32, #tpu.memory_space<vmem>>, vector<32x32xf32>
    %c0_1 = arith.constant 0 : index
    %c0_2 = arith.constant 0 : index
    %1 = vector.load %arg2[%c0_1, %c0_2] : memref<160x32xf32, #tpu.memory_space<vmem>>, vector<160x32xf32>
    %cst = arith.constant dense<0.000000e+00> : vector<32x160xf32>
    %2 = tpu.matmul %0, %1, %cst {dimension_numbers = #tpu.dot_dimension_numbers<[1], [1], [0], [0], [0, 0, 1, 0], [], []>} : vector<32x32xf32>, vector<160x32xf32>, vector<32x160xf32> -> vector<32x160xf32>
    %c0_3 = arith.constant 0 : index
    %c0_4 = arith.constant 0 : index
    %3 = vector.load %arg3[%c0_3, %c0_4] : memref<1x160xf32, #tpu.memory_space<vmem>>, vector<1x160xf32>
    %4 = vector.broadcast %3 : vector<1x160xf32> to vector<32x160xf32>
    %5 = arith.addf %2, %4 : vector<32x160xf32>
    %6 = vector.extract_strided_slice %5 {offsets = [0, 0], sizes = [32, 128], strides = [1, 1]} : vector<32x160xf32> to vector<32x128xf32>
    %7 = vector.extract_strided_slice %5 {offsets = [0, 128], sizes = [32, 32], strides = [1, 1]} : vector<32x160xf32> to vector<32x32xf32>
    %8 = vector.shape_cast %6 : vector<32x128xf32> to vector<4x8x128xf32>
    %cst_5 = arith.constant 2.000000e-01 : f32
    %9 = vector.broadcast %cst_5 : f32 to vector<4x8x128xf32>
    %10 = arith.mulf %8, %9 : vector<4x8x128xf32>
    %cst_6 = arith.constant dense<0xFF800000> : vector<4x128xf32>
    %11 = vector.multi_reduction <maximumf>, %10, %cst_6 [1] : vector<4x8x128xf32> to vector<4x128xf32>
    %12 = vector.shape_cast %11 : vector<4x128xf32> to vector<4x1x128xf32>
    %13 = vector.broadcast %12 : vector<4x1x128xf32> to vector<4x8x128xf32>
    %14 = arith.subf %10, %13 : vector<4x8x128xf32>
    %15 = math.exp %14 : vector<4x8x128xf32>
    %cst_7 = arith.constant dense<0.000000e+00> : vector<4x128xf32>
    %16 = vector.multi_reduction <add>, %15, %cst_7 [1] : vector<4x8x128xf32> to vector<4x128xf32>
    %17 = vector.shape_cast %16 : vector<4x128xf32> to vector<4x1x128xf32>
    %18 = vector.broadcast %17 : vector<4x1x128xf32> to vector<4x8x128xf32>
    %19 = arith.divf %15, %18 : vector<4x8x128xf32>
    %20 = arith.mulf %19, %8 : vector<4x8x128xf32>
    %cst_8 = arith.constant dense<0.000000e+00> : vector<4x128xf32>
    %21 = vector.multi_reduction <add>, %20, %cst_8 [1] : vector<4x8x128xf32> to vector<4x128xf32>
    %22 = tpu.iota {dimensions = array<i32: 1>} : vector<4x128xi32>
    %c101_i32 = arith.constant 101 : i32
    %23 = vector.broadcast %c101_i32 : i32 to vector<4x128xi32>
    %24 = arith.cmpi slt, %22, %23 : vector<4x128xi32>
    %cst_9 = arith.constant -1.000000e+30 : f32
    %25 = vector.broadcast %cst_9 : f32 to vector<4x128xf32>
    %26 = arith.select %24, %21, %25 : vector<4x128xi1>, vector<4x128xf32>
    %cst_10 = arith.constant dense<0xFF800000> : vector<4xf32>
    %27 = vector.multi_reduction <maximumf>, %26, %cst_10 [1] : vector<4x128xf32> to vector<4xf32>
    %28 = vector.shape_cast %27 : vector<4xf32> to vector<4x1xf32>
    %29 = vector.broadcast %28 : vector<4x1xf32> to vector<4x128xf32>
    %30 = arith.subf %26, %29 : vector<4x128xf32>
    %31 = math.exp %30 : vector<4x128xf32>
    %cst_11 = arith.constant dense<0.000000e+00> : vector<4xf32>
    %32 = vector.multi_reduction <add>, %31, %cst_11 [1] : vector<4x128xf32> to vector<4xf32>
    %33 = vector.shape_cast %32 : vector<4xf32> to vector<4x1xf32>
    %34 = tpu.reciprocal %33 {approx = true} : vector<4x1xf32> -> vector<4x1xf32>
    %35 = vector.broadcast %34 : vector<4x1xf32> to vector<4x128xf32>
    %36 = arith.mulf %31, %35 : vector<4x128xf32>
    %cst_12 = arith.constant 0.000000e+00 : f32
    %37 = vector.broadcast %cst_12 : f32 to vector<32x32xf32>
    %38 = arith.maximumf %7, %37 : vector<32x32xf32>
    %c0_13 = arith.constant 0 : index
    %c0_14 = arith.constant 0 : index
    %39 = vector.load %arg4[%c0_13, %c0_14] : memref<1x32xf32, #tpu.memory_space<vmem>>, vector<1x32xf32>
    %40 = vector.broadcast %39 : vector<1x32xf32> to vector<32x32xf32>
    %41 = arith.mulf %38, %40 : vector<32x32xf32>
    %cst_15 = arith.constant dense<0.000000e+00> : vector<32xf32>
    %42 = vector.multi_reduction <add>, %41, %cst_15 [1] : vector<32x32xf32> to vector<32xf32>
    %43 = vector.shape_cast %42 : vector<32xf32> to vector<32x1xf32>
    %c0_16 = arith.constant 0 : index
    %c0_17 = arith.constant 0 : index
    %44 = vector.load %arg5[%c0_16, %c0_17] : memref<1x1xf32, #tpu.memory_space<vmem>>, vector<1x1xf32>
    %45 = vector.broadcast %44 : vector<1x1xf32> to vector<32x1xf32>
    %46 = arith.addf %43, %45 : vector<32x1xf32>
    %c0_18 = arith.constant 0 : index
    %c0_19 = arith.constant 0 : index
    %47 = vector.load %arg6[%c0_18, %c0_19] : memref<32x1xf32, #tpu.memory_space<vmem>>, vector<32x1xf32>
    %cst_20 = arith.constant 0.000000e+00 : f32
    %48 = vector.broadcast %cst_20 : f32 to vector<32x1xf32>
    %49 = arith.maximumf %46, %48 : vector<32x1xf32>
    %50 = arith.mulf %46, %47 : vector<32x1xf32>
    %51 = arith.subf %49, %50 : vector<32x1xf32>
    %52 = math.absf %46 : vector<32x1xf32>
    %cst_21 = arith.constant 0.000000e+00 : f32
    %53 = vector.broadcast %cst_21 : f32 to vector<32x1xf32>
    %54 = arith.subf %53, %52 : vector<32x1xf32>
    %55 = math.exp %54 : vector<32x1xf32>
    %cst_22 = arith.constant 1.000000e+00 : f32
    %56 = vector.broadcast %cst_22 : f32 to vector<32x1xf32>
    %57 = arith.addf %56, %55 : vector<32x1xf32>
    %58 = math.log %57 : vector<32x1xf32>
    %59 = arith.addf %51, %58 : vector<32x1xf32>
    %60 = vector.shape_cast %59 : vector<32x1xf32> to vector<4x8x1xf32>
    %cst_23 = arith.constant dense<0.000000e+00> : vector<4x1xf32>
    %61 = vector.multi_reduction <add>, %60, %cst_23 [1] : vector<4x8x1xf32> to vector<4x1xf32>
    %cst_24 = arith.constant 8.000000e+00 : f32
    %62 = vector.broadcast %cst_24 : f32 to vector<4x1xf32>
    %63 = arith.divf %61, %62 : vector<4x1xf32>
    %c101_i32_25 = arith.constant 101 : i32
    %64 = vector.broadcast %c101_i32_25 : i32 to vector<4x128xi32>
    %65 = arith.cmpi eq, %22, %64 : vector<4x128xi32>
    %66 = vector.shape_cast %63 : vector<4x1xf32> to vector<4x1xf32>
    %67 = vector.broadcast %66 : vector<4x1xf32> to vector<4x128xf32>
    %68 = arith.select %65, %67, %36 : vector<4x128xi1>, vector<4x128xf32>
    %c0_26 = arith.constant 0 : index
    %c0_27 = arith.constant 0 : index
    %69 = vector.load %arg7[%c0_26, %c0_27] : memref<4x128xf32, #tpu.memory_space<vmem>>, vector<4x128xf32>
    tpu.vector_store %arg7[%c0_26, %c0_27], %68 {strides = array<i32>} : memref<4x128xf32, #tpu.memory_space<vmem>>, vector<4x128xf32>,
    return
  }
  func.func @transform_0(%arg0: i32) -> (i32, i32) {
    %c0_i32 = arith.constant 0 : i32
    %c0_i32_0 = arith.constant 0 : i32
    return %arg0, %c0_i32 : i32, i32
  }
  func.func @transform_1(%arg0: i32) -> (i32, i32) {
    %c0_i32 = arith.constant 0 : i32
    %c0_i32_0 = arith.constant 0 : i32
    %c0_i32_1 = arith.constant 0 : i32
    return %c0_i32, %c0_i32_0 : i32, i32
  }
  func.func @transform_2(%arg0: i32) -> (i32, i32) {
    %c0_i32 = arith.constant 0 : i32
    %c0_i32_0 = arith.constant 0 : i32
    %c0_i32_1 = arith.constant 0 : i32
    return %c0_i32, %c0_i32_0 : i32, i32
  }
  func.func @transform_3(%arg0: i32) -> (i32, i32) {
    %c0_i32 = arith.constant 0 : i32
    %c0_i32_0 = arith.constant 0 : i32
    %c0_i32_1 = arith.constant 0 : i32
    return %c0_i32, %c0_i32_0 : i32, i32
  }
  func.func @transform_4(%arg0: i32) -> (i32, i32) {
    %c0_i32 = arith.constant 0 : i32
    %c0_i32_0 = arith.constant 0 : i32
    %c0_i32_1 = arith.constant 0 : i32
    return %c0_i32, %c0_i32_0 : i32, i32
  }
  func.func @transform_5(%arg0: i32) -> (i32, i32) {
    %c0_i32 = arith.constant 0 : i32
    %c0_i32_0 = arith.constant 0 : i32
    return %arg0, %c0_i32 : i32, i32
  }
  func.func @transform_6(%arg0: i32) -> (i32, i32) {
    %c0_i32 = arith.constant 0 : i32
    %c0_i32_0 = arith.constant 0 : i32
    return %arg0, %c0_i32 : i32, i32
  }
}

</mosaic_0001>

<bundles_post_ra>
// kernel: tpu_custom_call.1
= control target key start
LH: loop header
LB: loop body
LE: loop exit
PB: predicated region body
PF: predicated region fallthrough
CT: control target
= control target key end

     0   :  { %s924_s0 = inlined_call_operand.vmem [shape: f32[32,32], index: 0, kind: input, shape index: {}]   ;;  %s925_s1 = inlined_call_operand.vmem [shape: f32[160,32], index: 1, kind: input, shape index: {}]   ;;  %s926_s2 = inlined_call_operand.vmem [shape: f32[1,160], index: 2, kind: input, shape index: {}]   ;;  %s927_s3 = inlined_call_operand.vmem [shape: f32[1,32], index: 3, kind: input, shape index: {}]   ;;  %s928_s4 = inlined_call_operand.<no memory space> [shape: f32[1,1], index: 4, kind: input, shape index: {}]   ;;  %s929_s5 = inlined_call_operand.vmem [shape: f32[32,1], index: 5, kind: input, shape index: {}]   ;;  %s930_s6 = inlined_call_operand.hbm [shape: f32[4,128], index: 6, kind: output, shape index: {}]  }
   0x1   :  { %v11_v0 = vstv %s928_s4 }
   0x2   :  { %12 = vst [vmem:[#allocation2] sm:$0x1] %v11_v0 }
   0x3   :  { %v45_v1 = vld [vmem:[%s925_s1 + $0x78] sm:$0xff]  ;;  %vm56_vm0 = vcmask 261120   ;;  %v44_v3 = vld [vmem:[%s925_s1 + $0x70] sm:$0xff]  ;;  %v43_v5 = vld [vmem:[%s925_s1 + $0x68] sm:$0xff] }
   0x4   :  { %v49_v2 = vld [vmem:[%s925_s1 + $0x98] sm:$0xff]  ;;  %525 = vmatpush.xpose.msk.msra.mxu0 %vm56_vm0, %v45_v1  ;;  %553 = vmatpush.xpose.msk.msra.mxu2 %vm56_vm0, %v45_v1  ;;  %v48_v4 = vld [vmem:[%s925_s1 + $0x90] sm:$0xff] }
   0x5   :  { %554 = vmatpush.xpose.msk.msra.mxu3 %vm56_vm0, %v45_v1  ;;  %545 = vmatpush.xpose.msk.msra.mxu1 %vm56_vm0, %v49_v2 }
   0x8   :  { %526 = vmatpush.xpose.msk.msra.mxu0 %vm56_vm0, %v44_v3  ;;  %555 = vmatpush.xpose.msk.msra.mxu2 %vm56_vm0, %v44_v3 }
   0x9   :  { %556 = vmatpush.xpose.msk.msra.mxu3 %vm56_vm0, %v44_v3  ;;  %546 = vmatpush.xpose.msk.msra.mxu1 %vm56_vm0, %v48_v4 }
   0xa   :  { %13 = vsyncpa [#allocation4], 0  ;;  %v47_v6 = vld [vmem:[%s925_s1 + $0x88] sm:$0xff]  ;;  %v42_v7 = vld [vmem:[%s925_s1 + $0x60] sm:$0xff]  ;;  %s516_s7 = sshll.u32 %s930_s6, 4  ;;  %s517_s7 = int_to_ptr.hbm [resolvable:$true] %s516_s7 }
   0xb   :  { %v46_v8 = vld [vmem:[%s925_s1 + $0x80] sm:$0xff]  ;;  %v41_v10 = vld [vmem:[%s925_s1 + $0x58] sm:$0xff]  ;;  %v40_v11 = vld [vmem:[%s925_s1 + $0x50] sm:$0xff] }
   0xc   :  { %527 = vmatpush.xpose.msk.msra.mxu0 %vm56_vm0, %v43_v5  ;;  %557 = vmatpush.xpose.msk.msra.mxu2 %vm56_vm0, %v43_v5  ;;  %v26_v9 = vld [vmem:[%s924_s0] sm:$0xff]  ;;  %v27_v12 = vld [vmem:[%s924_s0 + $0x8] sm:$0xff]  ;;  %v37_v15 = vld [vmem:[%s925_s1 + $0x38] sm:$0xff] }
   0xd   :  { %558 = vmatpush.xpose.msk.msra.mxu3 %vm56_vm0, %v43_v5  ;;  %547 = vmatpush.xpose.msk.msra.mxu1 %vm56_vm0, %v47_v6  ;;  %v39_v13 = vld [vmem:[%s925_s1 + $0x48] sm:$0xff]  ;;  %v38_v14 = vld [vmem:[%s925_s1 + $0x40] sm:$0xff]  ;;  %v28_v16 = vld [vmem:[%s924_s0 + $0x10] sm:$0xff] }
   0xe   :  { %v36_v17 = vld [vmem:[%s925_s1 + $0x30] sm:$0xff]  ;;  %v35_v18 = vld [vmem:[%s925_s1 + $0x28] sm:$0xff]  ;;  %v29_v19 = vld [vmem:[%s924_s0 + $0x18] sm:$0xff] }
   0xf   :  { %v34_v20 = vld [vmem:[%s925_s1 + $0x20] sm:$0xff]  ;;  %v33_v21 = vld [vmem:[%s925_s1 + $0x18] sm:$0xff]  ;;  %v32_v22 = vld [vmem:[%s925_s1 + $0x10] sm:$0xff] }
  0x10   :  { %528 = vmatpush.xpose.msk.msra.mxu0 %vm56_vm0, %v42_v7  ;;  %559 = vmatpush.xpose.msk.msra.mxu2 %vm56_vm0, %v42_v7  ;;  %v31_v23 = vld [vmem:[%s925_s1 + $0x8] sm:$0xff]  ;;  %v30_v24 = vld [vmem:[%s925_s1] sm:$0xff] }
  0x11   :  { %560 = vmatpush.xpose.msk.msra.mxu3 %vm56_vm0, %v42_v7  ;;  %548 = vmatpush.xpose.msk.msra.mxu1 %vm56_vm0, %v46_v8  ;;  %v50_v25 = vld [vmem:[%s926_s2] sm:$0x3] }
  0x12   :  { %v833_v26 = vperm.slane %v50_v25, 1  ;;  %v839_v29 = vld [vmem:[%s927_s3] ss:$0 sm:$0xff]  ;;  %v52_v43 = vperm.slane %v50_v25, 0 }
  0x14   :  { %549 = vmatmul.msk.f32.vlgmr.msra.gmra.mxu1 %vm56_vm0, %v26_v9  ;;  %529 = vmatpush.xpose.msk.msra.mxu0 %vm56_vm0, %v41_v10 }
  0x15   :  { %561 = vmatpush.xpose.msk.msra.mxu2 %vm56_vm0, %v41_v10  ;;  %562 = vmatpush.xpose.msk.msra.mxu3 %vm56_vm0, %v41_v10 }
  0x18   :  { %530 = vmatpush.xpose.msk.msra.mxu0 %vm56_vm0, %v40_v11 }
  0x19   :  { %563 = vmatpush.xpose.msk.msra.mxu2 %vm56_vm0, %v40_v11  ;;  %564 = vmatpush.xpose.msk.msra.mxu3 %vm56_vm0, %v40_v11 }
  0x1c   :  { %550 = vmatmul.msk.f32.gmra.mxu1 %vm56_vm0, %v27_v12  ;;  %531 = vmatpush.xpose.msk.msra.mxu0 %vm56_vm0, %v39_v13 }
  0x1d   :  { %565 = vmatpush.xpose.msk.msra.mxu2 %vm56_vm0, %v39_v13  ;;  %566 = vmatpush.xpose.msk.msra.mxu3 %vm56_vm0, %v39_v13 }
  0x20   :  { %532 = vmatpush.xpose.msk.msra.mxu0 %vm56_vm0, %v38_v14 }
  0x21   :  { %567 = vmatpush.xpose.msk.msra.mxu2 %vm56_vm0, %v38_v14  ;;  %568 = vmatpush.xpose.msk.msra.mxu3 %vm56_vm0, %v38_v14 }
  0x24   :  { %533 = vmatpush.xpose.msk.msra.mxu0 %vm56_vm0, %v37_v15  ;;  %551 = vmatmul.msk.f32.gmra.mxu1 %vm56_vm0, %v28_v16 }
  0x25   :  { %569 = vmatpush.xpose.msk.msra.mxu2 %vm56_vm0, %v37_v15  ;;  %570 = vmatpush.xpose.msk.msra.mxu3 %vm56_vm0, %v37_v15 }
  0x28   :  { %534 = vmatpush.xpose.msk.msra.mxu0 %vm56_vm0, %v36_v17 }
  0x29   :  { %571 = vmatpush.xpose.msk.msra.mxu2 %vm56_vm0, %v36_v17  ;;  %572 = vmatpush.xpose.msk.msra.mxu3 %vm56_vm0, %v36_v17 }
  0x2c   :  { %535 = vmatpush.xpose.msk.msra.mxu0 %vm56_vm0, %v35_v18  ;;  %552 = vmatmul.msk.f32.gmra.mxu1 %vm56_vm0, %v29_v19 }
  0x2d   :  { %573 = vmatpush.xpose.msk.msra.mxu2 %vm56_vm0, %v35_v18  ;;  %574 = vmatpush.xpose.msk.msra.mxu3 %vm56_vm0, %v35_v18 }
  0x30   :  { %536 = vmatpush.xpose.msk.msra.mxu0 %vm56_vm0, %v34_v20 }
  0x31   :  { %575 = vmatpush.xpose.msk.msra.mxu2 %vm56_vm0, %v34_v20  ;;  %576 = vmatpush.xpose.msk.msra.mxu3 %vm56_vm0, %v34_v20 }
  0x34   :  { %537 = vmatpush.xpose.msk.msra.mxu0 %vm56_vm0, %v33_v21 }
  0x35   :  { %577 = vmatpush.xpose.msk.msra.mxu2 %vm56_vm0, %v33_v21  ;;  %578 = vmatpush.xpose.msk.msra.mxu3 %vm56_vm0, %v33_v21 }
  0x38   :  { %538 = vmatpush.xpose.msk.msra.mxu0 %vm56_vm0, %v32_v22 }
  0x39   :  { %579 = vmatpush.xpose.msk.msra.mxu2 %vm56_vm0, %v32_v22  ;;  %580 = vmatpush.xpose.msk.msra.mxu3 %vm56_vm0, %v32_v22 }
  0x3c   :  { %539 = vmatpush.xpose.msk.msra.mxu0 %vm56_vm0, %v31_v23 }
  0x3d   :  { %581 = vmatpush.xpose.msk.msra.mxu2 %vm56_vm0, %v31_v23  ;;  %582 = vmatpush.xpose.msk.msra.mxu3 %vm56_vm0, %v31_v23 }
  0x40   :  { %540 = vmatpush.xpose.msk.msra.mxu0 %vm56_vm0, %v30_v24 }
  0x41   :  { %583 = vmatpush.xpose.msk.msra.mxu2 %vm56_vm0, %v30_v24  ;;  %584 = vmatpush.xpose.msk.msra.mxu3 %vm56_vm0, %v30_v24 }
  0x43   :  { %541 = vmatmul.msk.f32.vlgmr.msra.gmra.mxu0 %vm56_vm0, %v26_v9 }
  0x44   :  { %542 = vmatmul.msk.f32.vlgmr.msra.gmra.mxu2 %vm56_vm0, %v27_v12  ;;  %543 = vmatmul.msk.f32.vlgmr.msra.gmra.mxu3 %vm56_vm0, %v28_v16 }
  0x4c   :  { %544 = vmatmul.msk.f32.gmra.mxu3 %vm56_vm0, %v29_v19 }
  0x91   :  { %v175_v27 = vpop.f32.mrf.mxu1 }
  0x92   :  { %v176_v28 = vadd.f32 %v175_v27, %v833_v26 }
  0x94   :  { %v366_v30 = vmax.f32 %v176_v28, 0.0 }
  0x96   :  { %v374_v31 = vmul.f32 %v839_v29, %v366_v30 }
  0x98   :  { %v378_v32 = vsel %vm56_vm0, %v374_v31, 0.0 }
  0x99   :  { %v178_v33 = vpop.f32.mrf.mxu1  ;;  %379 = vadd.xlane.f32.xlu0 %v378_v32 }
  0x9a   :  { %v179_v34 = vadd.f32 %v178_v33, %v833_v26 }
  0x9c   :  { %v367_v35 = vmax.f32 %v179_v34, 0.0 }
  0x9e   :  { %v375_v36 = vmul.f32 %v839_v29, %v367_v35 }
  0xa0   :  { %v381_v37 = vsel %vm56_vm0, %v375_v36, 0.0 }
  0xa1   :  { %382 = vadd.xlane.f32.xlu0 %v381_v37  ;;  %v181_v38 = vpop.f32.mrf.mxu1 }
  0xa2   :  { %v182_v39 = vadd.f32 %v181_v38, %v833_v26 }
  0xa4   :  { %v368_v40 = vmax.f32 %v182_v39, 0.0 }
  0xa6   :  { %v376_v41 = vmul.f32 %v839_v29, %v368_v40 }
  0xa8   :  { %v384_v42 = vsel %vm56_vm0, %v376_v41, 0.0 }
  0xa9   :  { %385 = vadd.xlane.f32.xlu1 %v384_v42  ;;  %v184_v25 = vpop.f32.mrf.mxu1 }
  0xaa   :  { %v185_v30 = vadd.f32 %v184_v25, %v833_v26 }
  0xac   :  { %v369_v34 = vmax.f32 %v185_v30, 0.0 }
  0xae   :  { %v377_v39 = vmul.f32 %v839_v29, %v369_v34 }
  0xb0   :  { %v387_v42 = vsel %vm56_vm0, %v377_v39, 0.0 }
  0xb1   :  { %388 = vadd.xlane.f32.xlu1 %v387_v42 }
  0xc0   :  { %v146_v44 = vpop.f32.mrf.mxu0 }
  0xc1   :  { %v849_v45 = vadd.f32 %v146_v44, %v52_v43 }
  0xc3   :  { %v187_v46 = vmul.f32 0.2, %v849_v45 }
  0xc5   :  { %v191_v47 = vrot.slane %v187_v46, 4 }
  0xc7   :  { %v192_v48 = vmax.f32 %v187_v46, %v191_v47  ;;  %v149_v49 = vpop.f32.mrf.mxu2  ;;  %v152_v50 = vpop.f32.mrf.mxu3 }
  0xc8   :  { %v852_v51 = vadd.f32 %v149_v49, %v52_v43  ;;  %v854_v52 = vadd.f32 %v152_v50, %v52_v43 }
  0xc9   :  { %v193_v53 = vrot.slane %v192_v48, 2 }
  0xca   :  { %v188_v54 = vmul.f32 0.2, %v852_v51  ;;  %v189_v55 = vmul.f32 0.2, %v854_v52 }
  0xcb   :  { %v194_v56 = vmax.f32 %v192_v48, %v193_v53 }
  0xcc   :  { %v197_v57 = vrot.slane %v188_v54, 4  ;;  %v203_v58 = vrot.slane %v189_v55, 4 }
  0xcd   :  { %v195_v59 = vrot.slane %v194_v56, 1 }
  0xce   :  { %v198_v60 = vmax.f32 %v188_v54, %v197_v57  ;;  %v204_v61 = vmax.f32 %v189_v55, %v203_v58 }
  0xcf   :  { %v196_v62 = vmax.f32 %v194_v56, %v195_v59  ;;  %v155_v63 = vpop.f32.mrf.mxu3 }
  0xd0   :  { %v199_v0 = vrot.slane %v198_v60, 2  ;;  %v205_v1 = vrot.slane %v204_v61, 2  ;;  %v858_v2 = vadd.f32 %v155_v63, %v52_v43 }
  0xd1   :  { %v215_v3 = vsub.f32 %v187_v46, %v196_v62 }
  0xd2   :  { %v200_v4 = vmax.f32 %v198_v60, %v199_v0  ;;  %v206_v5 = vmax.f32 %v204_v61, %v205_v1  ;;  %v190_v6 = vmul.f32 0.2, %v858_v2 }
  0xd3   :  { %v219_v7 = vmul.f32 1.442695, %v215_v3 }
  0xd4   :  { %v201_v8 = vrot.slane %v200_v4, 1  ;;  %v207_v9 = vrot.slane %v206_v5, 1  ;;  %v209_v10 = vrot.slane %v190_v6, 4 }
  0xd5   :  { %593 = vpow2.f32 %v219_v7 }
  0xd6   :  { %v202_v11 = vmax.f32 %v200_v4, %v201_v8  ;;  %v208_v12 = vmax.f32 %v206_v5, %v207_v9  ;;  %v210_v13 = vmax.f32 %v190_v6, %v209_v10 }
  0xd8   :  { %v216_v14 = vsub.f32 %v188_v54, %v202_v11  ;;  %v217_v15 = vsub.f32 %v189_v55, %v208_v12  ;;  %v211_v16 = vrot.slane %v210_v13, 2 }
  0xda   :  { %v221_v17 = vmul.f32 1.442695, %v216_v14  ;;  %v223_v18 = vmul.f32 1.442695, %v217_v15  ;;  %v212_v19 = vmax.f32 %v210_v13, %v211_v16 }
  0xdb   :  { %v594_v20 = vpop.eup %593 }
  0xdc   :  { %v227_v21 = vrot.slane %v594_v20, 4  ;;  %595 = vpow2.f32 %v221_v17  ;;  %v213_v22 = vrot.slane %v212_v19, 1 }
  0xdd   :  { %597 = vpow2.f32 %v223_v18 }
  0xde   :  { %v228_v23 = vadd.f32 %v594_v20, %v227_v21  ;;  %v214_v24 = vmax.f32 %v212_v19, %v213_v22 }
  0xe0   :  { %v229_v27 = vrot.slane %v228_v23, 2  ;;  %v218_v28 = vsub.f32 %v190_v6, %v214_v24 }
  0xe2   :  { %v862_v31 = vpop.eup %595  ;;  %v230_v32 = vadd.f32 %v229_v27, %v228_v23  ;;  %v225_v33 = vmul.f32 1.442695, %v218_v28 }
  0xe3   :  { %v864_v35 = vpop.eup %597  ;;  %v233_v36 = vrot.slane %v862_v31, 4 }
  0xe4   :  { %v231_v37 = vrot.slane %v230_v32, 1  ;;  %v239_v38 = vrot.slane %v864_v35, 4  ;;  %599 = vpow2.f32 %v225_v33 }
  0xe5   :  { %v234_v40 = vadd.f32 %v862_v31, %v233_v36 }
  0xe6   :  { %v232_v41 = vadd.f32 %v231_v37, %v230_v32  ;;  %v240_v26 = vadd.f32 %v864_v35, %v239_v38 }
  0xe7   :  { %v235_v43 = vrot.slane %v234_v40, 2 }
  0xe8   :  { %601 = vrcp.f32 %v232_v41  ;;  %v241_v46 = vrot.slane %v240_v26, 2  ;;  %v262_v60 = vand.u32 2147483648, %v232_v41  ;;  %v260_v62 = vand.u32 2147483647, %v232_v41 }
  0xe9   :  { %v236_v44 = vadd.f32 %v235_v43, %v234_v40  ;;  %vm256_vm2 = vweird.f32 %v232_v41 }
  0xea   :  { %v872_v47 = vpop.eup %599  ;;  %v242_v49 = vadd.f32 %v241_v46, %v240_v26  ;;  %v263_v4 = vor.u32 1.1754944e-38, %v262_v60  ;;  %vm261_vm4 = vcmp.eq.f32.partialorder %v260_v62, 8.507059e+37 }
  0xeb   :  { %v237_v48 = vrot.slane %v236_v44, 1  ;;  %v245_v50 = vrot.slane %v872_v47, 4 }
  0xec   :  { %v243_v29 = vrot.slane %v242_v49, 1 }
  0xed   :  { %v238_v53 = vadd.f32 %v237_v48, %v236_v44  ;;  %v246_v54 = vadd.f32 %v872_v47, %v245_v50 }
  0xee   :  { %v602_v55 = vpop.eup %601  ;;  %v244_v57 = vadd.f32 %v243_v29, %v242_v49  ;;  %v881_v29 = vld [vmem:[#allocation2] ss:$0 sm:$0xff] }
  0xef   :  { %v252_v56 = vmul.f32 %v602_v55, %v232_v41  ;;  %603 = vrcp.f32 %v238_v53  ;;  %v247_v58 = vrot.slane %v246_v54, 2  ;;  %vm257_vm1 = vweird.f32 %v602_v55 }
  0xf0   :  { %605 = vrcp.f32 %v244_v57  ;;  %vm258_vm3 = vmor %vm256_vm2, %vm257_vm1  ;;  %v277_v12 = vand.u32 2147483648, %v238_v53  ;;  %v275_v15 = vand.u32 2147483647, %v238_v53  ;;  %vm271_vm6 = vweird.f32 %v238_v53 }
  0xf1   :  { %v253_v59 = vsub.f32 1.0, %v252_v56  ;;  %v248_v63 = vadd.f32 %v247_v58, %v246_v54  ;;  %v292_v19 = vand.u32 2147483648, %v244_v57  ;;  %v290_v23 = vand.u32 2147483647, %v244_v57 }
  0xf2   :  { %v278_v21 = vor.u32 1.1754944e-38, %v277_v12  ;;  %vm276_vm9 = vcmp.eq.f32.partialorder %v275_v15, 8.507059e+37  ;;  %vm286_vm10 = vweird.f32 %v244_v57  ;;  %vm346_vm1 = vcmask 1041409  }
  0xf3   :  { %v254_v61 = vmul.f32 %v602_v55, %v253_v59  ;;  %v249_v3 = vrot.slane %v248_v63, 1  ;;  %v293_v32 = vor.u32 1.1754944e-38, %v292_v19  ;;  %vm291_vm12 = vcmp.eq.f32.partialorder %v290_v23, 8.507059e+37 }
  0xf4   :  { %vm348_vm2 = vcmask 1042434  }
  0xf5   :  { %v604_v0 = vpop.eup %603  ;;  %v255_v1 = vadd.f32 %v602_v55, %v254_v61  ;;  %v250_v7 = vadd.f32 %v249_v3, %v248_v63  ;;  %v339_v3 = vlaneseq }
  0xf6   :  { %v267_v5 = vmul.f32 %v604_v0, %v238_v53  ;;  %v606_v8 = vpop.eup %605  ;;  %vm272_vm5 = vweird.f32 %v604_v0 }
  0xf7   :  { %v259_v6 = vsel %vm258_vm3, %v602_v55, %v255_v1  ;;  %v282_v13 = vmul.f32 %v606_v8, %v244_v57  ;;  %607 = vrcp.f32 %v250_v7  ;;  %vm273_vm7 = vmor %vm271_vm6, %vm272_vm5  ;;  %vm287_vm8 = vweird.f32 %v606_v8 }
  0xf8   :  { %v264_v9 = vsel %vm261_vm4, %v263_v4, %v259_v6  ;;  %v268_v10 = vsub.f32 1.0, %v267_v5  ;;  %vm288_vm11 = vmor %vm286_vm10, %vm287_vm8  ;;  %v305_v39 = vand.u32 2147483647, %v250_v7  ;;  %v307_v40 = vand.u32 2147483648, %v250_v7 }
  0xf9   :  { %v265_v11 = vmul.f32 %v594_v20, %v264_v9  ;;  %v283_v16 = vsub.f32 1.0, %v282_v13  ;;  %vm301_vm14 = vweird.f32 %v250_v7  ;;  %vm350_vm3 = vcmask 1043459  }
  0xfa   :  { %v269_v14 = vmul.f32 %v604_v0, %v268_v10  ;;  %v308_v48 = vor.u32 1.1754944e-38, %v307_v40  ;;  %vm306_vm0 = vcmp.eq.f32.partialorder %v305_v39, 8.507059e+37  ;;  %vm354_vm5 = vcmask 1043456  }
  0xfb   :  { %v311_v17 = vmul.f32 %v265_v11, %v849_v45  ;;  %v284_v22 = vmul.f32 %v606_v8, %v283_v16  ;;  %vm446_vm6 = vcmask 7168  }
  0xfc   :  { %v270_v18 = vadd.f32 %v604_v0, %v269_v14 }
  0xfd   :  { %v608_v20 = vpop.eup %607  ;;  %v285_v27 = vadd.f32 %v606_v8, %v284_v22  ;;  %v315_v28 = vrot.slane %v311_v17, 4  ;;  %v658_v22 = vmov 8.0  }
  0xfe   :  { %v274_v24 = vsel %vm273_vm7, %v604_v0, %v270_v18  ;;  %v297_v45 = vmul.f32 %v608_v20, %v250_v7  ;;  %vm302_vm13 = vweird.f32 %v608_v20 }
  0xff   :  { %v279_v25 = vsel %vm276_vm9, %v278_v21, %v274_v24  ;;  %v289_v33 = vsel %vm288_vm11, %v606_v8, %v285_v27  ;;  %v316_v41 = vadd.f32 %v315_v28, %v311_v17  ;;  %vm303_vm15 = vmor %vm301_vm14, %vm302_vm13  ;;  %v657_v17 = vmov 0  }
 0x100   :  { %v280_v30 = vmul.f32 %v862_v31, %v279_v25  ;;  %v294_v36 = vsel %vm291_vm12, %v293_v32, %v289_v33  ;;  %v298_v37 = vsub.f32 1.0, %v297_v45  ;;  %589 = vset.pattern.permute.xlu1 %v657_v17  ;;  %588 = vset.pattern.permute.xlu0 %v657_v17  ;;  %v398_v25 = vld [vmem:[%s929_s5] sm:$0xff] }
 0x101   :  { %v295_v38 = vmul.f32 %v864_v35, %v294_v36  ;;  %v317_v49 = vrot.slane %v316_v41, 2  ;;  %590 = vset.pattern.permute.xlu2 %v657_v17 }
 0x102   :  { %v312_v34 = vmul.f32 %v280_v30, %v852_v51  ;;  %v299_v42 = vmul.f32 %v608_v20, %v298_v37 }
 0x103   :  { %v313_v43 = vmul.f32 %v295_v38, %v854_v52  ;;  %v318_v57 = vadd.f32 %v317_v49, %v316_v41 }
 0x104   :  { %v321_v26 = vrot.slane %v312_v34, 4  ;;  %v300_v44 = vadd.f32 %v608_v20, %v299_v42  ;;  %v399_v42 = vld [vmem:[%s929_s5 + $0x8] sm:$0xff] }
 0x105   :  { %v327_v46 = vrot.slane %v313_v43, 4  ;;  %v319_v0 = vrot.slane %v318_v57, 1 }
 0x106   :  { %v322_v31 = vadd.f32 %v321_v26, %v312_v34  ;;  %v304_v50 = vsel %vm303_vm15, %v608_v20, %v300_v44 }
 0x107   :  { %v328_v53 = vadd.f32 %v327_v46, %v313_v43  ;;  %v309_v35 = vsel %vm306_vm0, %v308_v48, %v304_v50 }
 0x108   :  { %v323_v51 = vrot.slane %v322_v31, 2  ;;  %v310_v55 = vmul.f32 %v872_v47, %v309_v35  ;;  %v320_v47 = vadd.f32 %v319_v0, %v318_v57 }
 0x109   :  { %v329_v56 = vrot.slane %v328_v53, 2 }
 0x10a   :  { %v324_v54 = vadd.f32 %v323_v51, %v322_v31  ;;  %v314_v52 = vmul.f32 %v310_v55, %v858_v2  ;;  %v886_v2 = vand.u32 127, %v339_v3 }
 0x10b   :  { %v330_v59 = vadd.f32 %v329_v56, %v328_v53  ;;  %v400_v56 = vld [vmem:[%s929_s5 + $0x10] sm:$0xff] }
 0x10c   :  { %v380_v58 = vpop.xlane.xlu0 %379  ;;  %v325_v61 = vrot.slane %v324_v54, 1  ;;  %v333_v62 = vrot.slane %v314_v52, 4  ;;  %vm341_vm4 = vcmp.lt.s32.totalorder %v886_v2, 101  ;;  %vm486_vm8 = vcmp.eq.s32.totalorder %v886_v2, 101 }
 0x10d   :  { %v394_v60 = vadd.f32 %v881_v29, %v380_v58  ;;  %v331_v4 = vrot.slane %v330_v59, 1 }
 0x10e   :  { %v334_v1 = vadd.f32 %v333_v62, %v314_v52  ;;  %v326_v6 = vadd.f32 %v325_v61, %v324_v54 }
 0x10f   :  { %v414_v63 = vand.u32 2147483647, %v394_v60  ;;  %v332_v12 = vadd.f32 %v331_v4, %v330_v59  ;;  %v402_v45 = vmax.f32 %v394_v60, 0.0  ;;  %v406_v33 = vmul.f32 %v398_v25, %v394_v60 }
 0x110   :  { %v335_v7 = vrot.slane %v334_v1, 2  ;;  %v347_v14 = vsel %vm346_vm1, %v326_v6, %v320_v47 }
 0x111   :  { %v418_v5 = vsub.f32 0.0, %v414_v63  ;;  %v349_v19 = vsel %vm348_vm2, %v332_v12, %v347_v14  ;;  %v410_v39 = vsub.f32 %v402_v45, %v406_v33 }
 0x112   :  { %v336_v9 = vadd.f32 %v335_v7, %v334_v1 }
 0x113   :  { %v422_v8 = vmul.f32 1.442695, %v418_v5 }
 0x114   :  { %v383_v10 = vpop.xlane.xlu0 %382  ;;  %v337_v13 = vrot.slane %v336_v9, 1 }
 0x115   :  { %609 = vpow2.f32 %v422_v8  ;;  %v395_v11 = vadd.f32 %v881_v29, %v383_v10 }
 0x116   :  { %v338_v16 = vadd.f32 %v337_v13, %v336_v9  ;;  %611 = vrcp.f32 %v658_v22 }
 0x117   :  { %v415_v15 = vand.u32 2147483647, %v395_v11  ;;  %v403_v46 = vmax.f32 %v395_v11, 0.0  ;;  %v407_v48 = vmul.f32 %v399_v42, %v395_v11 }
 0x118   :  { %v351_v21 = vsel %vm350_vm3, %v338_v16, %v349_v19 }
 0x119   :  { %v419_v18 = vsub.f32 0.0, %v415_v15  ;;  %v893_v20 = vsel %vm341_vm4, %v351_v21, -1e+30  ;;  %v411_v35 = vsub.f32 %v403_v46, %v407_v48 }
 0x11a   :  { %v355_v28 = vsel %vm354_vm5, %v893_v20, -inf }
 0x11b   :  { %v610_v23 = vpop.eup %609  ;;  %v424_v24 = vmul.f32 1.442695, %v419_v18  ;;  %356 = vmax.xlane.f32.xlu2 %v355_v28 }
 0x11c   :  { %v430_v27 = vadd.f32 1.0, %v610_v23  ;;  %v386_v30 = vpop.xlane.xlu1 %385  ;;  %v612_v36 = vpop.eup %611 }
 0x11d   :  { %613 = vpow2.f32 %v424_v24  ;;  %v396_v32 = vadd.f32 %v881_v29, %v386_v30  ;;  %v476_v41 = vmul.f32 8.0, %v612_v36  ;;  %vm480_vm7 = vweird.f32 %v612_v36 }
 0x11e   :  { %615 = vlog2.f32 %v430_v27 }
 0x11f   :  { %v416_v34 = vand.u32 2147483647, %v396_v32  ;;  %v477_v49 = vsub.f32 1.0, %v476_v41  ;;  %v404_v61 = vmax.f32 %v396_v32, 0.0  ;;  %v408_v62 = vmul.f32 %v400_v56, %v396_v32 }
 0x121   :  { %v420_v37 = vsub.f32 0.0, %v416_v34  ;;  %v478_v54 = vmul.f32 %v612_v36, %v477_v49  ;;  %v412_v5 = vsub.f32 %v404_v61, %v408_v62 }
 0x123   :  { %v614_v38 = vpop.eup %613  ;;  %v426_v40 = vmul.f32 1.442695, %v420_v37  ;;  %v479_v63 = vadd.f32 %v612_v36, %v478_v54 }
 0x124   :  { %v616_v26 = vpop.eup %615  ;;  %v431_v43 = vadd.f32 1.0, %v614_v38  ;;  %v389_v27 = vpop.xlane.xlu1 %388 }
 0x125   :  { %v435_v31 = vmul.f32 0.6931472, %v616_v26  ;;  %617 = vpow2.f32 %v426_v40  ;;  %v481_v6 = vsel %vm480_vm7, %v612_v36, %v479_v63  ;;  %v397_v28 = vadd.f32 %v881_v29, %v389_v27  ;;  %v401_v36 = vld [vmem:[%s929_s5 + $0x18] sm:$0xff]  ;;  %s659_s5 = smov [#allocation3]  }
 0x126   :  { %619 = vlog2.f32 %v431_v43  ;;  %s514_s28 = sshll.u32 %s659_s5, 4  ;;  %s515_s28 = int_to_ptr.vmem [resolvable:$true] %s514_s28 }
 0x127   :  { %v442_v44 = vadd.f32 %v435_v31, %v410_v39  ;;  %v417_v30 = vand.u32 2147483647, %v397_v28  ;;  %v405_v37 = vmax.f32 %v397_v28, 0.0  ;;  %v409_v38 = vmul.f32 %v401_v36, %v397_v28 }
 0x129   :  { %v447_v51 = vsel %vm446_vm6, %v442_v44, 0.0  ;;  %v421_v32 = vsub.f32 0.0, %v417_v30  ;;  %v413_v40 = vsub.f32 %v405_v37, %v409_v38 }
 0x12a   :  { %v448_v50 = vrot.slane %v447_v51, 4 }
 0x12b   :  { %v618_v53 = vpop.eup %617  ;;  %v428_v45 = vmul.f32 1.442695, %v421_v32 }
 0x12c   :  { %v620_v55 = vpop.eup %619  ;;  %v432_v57 = vadd.f32 1.0, %v618_v53  ;;  %v449_v52 = vadd.f32 %v448_v50, %v447_v51 }
 0x12d   :  { %v437_v58 = vmul.f32 0.6931472, %v620_v55 }
 0x12e   :  { %621 = vlog2.f32 %v432_v57  ;;  %v450_v59 = vrot.slane %v449_v52, 2 }
 0x12f   :  { %v443_v60 = vadd.f32 %v437_v58, %v411_v35  ;;  %623 = vpow2.f32 %v428_v45 }
 0x130   :  { %v451_v0 = vadd.f32 %v450_v59, %v449_v52 }
 0x131   :  { %v454_v1 = vsel %vm446_vm6, %v443_v60, 0.0 }
 0x132   :  { %v452_v3 = vrot.slane %v451_v0, 1  ;;  %v455_v4 = vrot.slane %v454_v1, 4 }
 0x134   :  { %v622_v7 = vpop.eup %621  ;;  %v453_v8 = vadd.f32 %v452_v3, %v451_v0  ;;  %v456_v47 = vadd.f32 %v455_v4, %v454_v1 }
 0x135   :  { %v439_v9 = vmul.f32 0.6931472, %v622_v7  ;;  %v624_v33 = vpop.eup %623 }
 0x136   :  { %v482_v10 = vmul.f32 %v481_v6, %v453_v8  ;;  %v457_v11 = vrot.slane %v456_v47, 2  ;;  %v433_v34 = vadd.f32 1.0, %v624_v33 }
 0x137   :  { %v444_v12 = vadd.f32 %v439_v9, %v412_v5 }
 0x138   :  { %489 = vperm.xlu0 %588, %v482_v10   ;;  %v458_v13 = vadd.f32 %v457_v11, %v456_v47  ;;  %625 = vlog2.f32 %v433_v34 }
 0x139   :  { %v461_v14 = vsel %vm446_vm6, %v444_v12, 0.0 }
 0x13a   :  { %v459_v15 = vrot.slane %v458_v13, 1  ;;  %v462_v16 = vrot.slane %v461_v14, 4 }
 0x13c   :  { %v460_v17 = vadd.f32 %v459_v15, %v458_v13  ;;  %v463_v18 = vadd.f32 %v462_v16, %v461_v14 }
 0x13e   :  { %v483_v19 = vmul.f32 %v481_v6, %v460_v17  ;;  %v464_v21 = vrot.slane %v463_v18, 2  ;;  %v626_v39 = vpop.eup %625 }
 0x13f   :  { %v441_v41 = vmul.f32 0.6931472, %v626_v39 }
 0x140   :  { %493 = vperm.xlu1 %589, %v483_v19   ;;  %v465_v22 = vadd.f32 %v464_v21, %v463_v18 }
 0x141   :  { %v445_v43 = vadd.f32 %v441_v41, %v413_v40 }
 0x142   :  { %v466_v23 = vrot.slane %v465_v22, 1 }
 0x143   :  { %v468_v31 = vsel %vm446_vm6, %v445_v43, 0.0 }
 0x144   :  { %v467_v24 = vadd.f32 %v466_v23, %v465_v22  ;;  %v469_v46 = vrot.slane %v468_v31, 4 }
 0x146   :  { %v484_v25 = vmul.f32 %v481_v6, %v467_v24  ;;  %v470_v49 = vadd.f32 %v469_v46, %v468_v31 }
 0x148   :  { %497 = vperm.xlu2 %590, %v484_v25   ;;  %v471_v51 = vrot.slane %v470_v49, 2 }
 0x14a   :  { %v472_v50 = vadd.f32 %v471_v51, %v470_v49 }
 0x14c   :  { %v473_v53 = vrot.slane %v472_v50, 1 }
 0x14e   :  { %v474_v35 = vadd.f32 %v473_v53, %v472_v50 }
 0x150   :  { %v485_v54 = vmul.f32 %v481_v6, %v474_v35 }
 0x18e   :  { %v357_v26 = vpop.xlane.xlu2 %356 }
 0x18f   :  { %v358_v42 = vsub.f32 %v893_v20, %v357_v26 }
 0x191   :  { %v359_v29 = vmul.f32 1.442695, %v358_v42 }
 0x193   :  { %627 = vpow2.f32 %v359_v29 }
 0x199   :  { %v628_v44 = vpop.eup %627 }
 0x19a   :  { %v361_v48 = vsel %vm354_vm5, %v628_v44, 0.0 }
 0x19b   :  { %362 = vadd.xlane.f32.xlu2 %v361_v48 }
 0x1a2   :  { %v498_v55 = vpop.permute.xlu2 %497 }
 0x1aa   :  { %v490_v57 = vpop.permute.xlu0 %489 }
 0x1b2   :  { %v494_v20 = vpop.permute.xlu1 %493 }
 0x1b3   :  { %501 = vperm.xlu2 %590, %v485_v54   ;;  %v503_v52 = vsel %vm346_vm1, %v494_v20, %v490_v57 }
 0x1b4   :  { %v504_v59 = vsel %vm348_vm2, %v498_v55, %v503_v52 }
 0x20e   :  { %v363_v56 = vpop.xlane.xlu2 %362 }
 0x20f   :  { %629 = vrcp.f32 %v363_v56 }
 0x215   :  { %v630_v58 = vpop.eup %629 }
 0x216   :  { %v365_v60 = vmul.f32 %v630_v58, %v628_v44  ;;  %v502_v61 = vpop.permute.xlu2 %501 }
 0x217   :  { %v505_v62 = vsel %vm350_vm3, %v502_v61, %v504_v59 }
 0x218   :  { %v507_v63 = vsel %vm486_vm8, %v505_v62, %v365_v60 }
 0x219   :  { %508 = vst [vmem:[#allocation3] sm:$0xf] %v507_v63 }
 0x21a   :  { %519 = dma.vmem_to_hbm [thread:$0]  %s515_s28, 64, %s517_s7, [#allocation4]  }
 0x21b   :  { %655 = dma.done.wait [#allocation4], 64  }
 0x21c   :  { %656 = vsyncadd [#allocation4], 4294967232 }
 0x21d   :  { %524 = vsyncpa [#allocation4], 1 }

</bundles_post_ra>
